<compile_context>
chip_gen: v6e
topology: v6e:2x2x1
jax: 0.10.0
libtpu: 0.0.40
codegen_flags: <defaults>
</compile_context>

<pallas_src>
import functools

import jax
import jax.numpy as jnp
from jax.experimental import pallas as pl
from jax.experimental.pallas import tpu as pltpu

LANE = 128
SUBLANE = 8


def _round_up(x, m):
    return ((x + m - 1) // m) * m


def _choose_block_b(batch):
    """Pick a batch tile: big enough to feed the MXU, >=2 grid steps when possible."""
    if batch <= 2 * SUBLANE:
        return _round_up(max(batch, 1), SUBLANE)
    # At least two grid steps (lets v7x shard the parallel axis over both TCs),
    # capped at 1024 rows so VMEM stays comfortably under the scoped limit.
    half = _round_up(pl.cdiv(batch, 2), SUBLANE)
    return min(1024, half)


def actor_kernel(obs_ref, w1_ref, b1_ref, w2_ref, b2_ref, w3_ref, b3_ref, out_ref):
    """Fused MLP hot path: 3 MXU matmuls (bf16 operands, f32 accumulate) + f32
    bias/relu/tanh, all resident in VMEM."""
    mxu_dtype = w1_ref.dtype  # bf16 by default (f32 if caller requests it)
    x = obs_ref[...].astype(mxu_dtype)

    h1 = jnp.dot(x, w1_ref[...], preferred_element_type=jnp.float32) + b1_ref[...]
    h1 = jnp.maximum(h1, 0.0)

    h2 = jnp.dot(h1.astype(mxu_dtype), w2_ref[...],
                 preferred_element_type=jnp.float32) + b2_ref[...]
    h2 = jnp.maximum(h2, 0.0)

    y = jnp.dot(h2.astype(mxu_dtype), w3_ref[...],
                preferred_element_type=jnp.float32) + b3_ref[...]
    out_ref[...] = jnp.tanh(y).astype(out_ref.dtype)


@functools.partial(jax.jit, static_argnames=("block_b", "mxu_dtype"))
def _actor_forward_impl(obs, w1, b1, w2, b2, w3, b3, block_b, mxu_dtype):
    B, obs_size = obs.shape
    h1 = w1.shape[1]
    h2 = w2.shape[1]
    act = w3.shape[1]

    act_pad = _round_up(act, LANE)          # lane-dense output
    B_pad = _round_up(B, block_b)           # ragged batch -> zero pad

    # Pad fc3 to 128 output lanes (zeros -> tanh(0)=0 in the padded columns).
    w3p = jnp.zeros((h2, act_pad), w3.dtype).at[:, :act].set(w3)
    b3p = jnp.zeros((1, act_pad), b3.dtype).at[:, :act].set(b3)

    # Cast MXU operands once, outside the grid. Biases stay f32.
    w1c = w1.astype(mxu_dtype)
    w2c = w2.astype(mxu_dtype)
    w3c = w3p.astype(mxu_dtype)

    if B_pad != B:
        obs = jnp.pad(obs, ((0, B_pad - B), (0, 0)))

    grid = (B_pad // block_b,)

    # Constant index maps for weights/biases -> fetched once, kept resident in
    # VMEM across grid steps; only obs/out tiles stream.
    in_specs = [
        pl.BlockSpec((block_b, obs_size), lambda i: (i, 0)),   # obs tile
        pl.BlockSpec((obs_size, h1), lambda i: (0, 0)),        # w1 (bf16)
        pl.BlockSpec((1, h1), lambda i: (0, 0)),               # b1 (f32)
        pl.BlockSpec((h1, h2), lambda i: (0, 0)),              # w2 (bf16)
        pl.BlockSpec((1, h2), lambda i: (0, 0)),               # b2 (f32)
        pl.BlockSpec((h2, act_pad), lambda i: (0, 0)),         # w3 padded (bf16)
        pl.BlockSpec((1, act_pad), lambda i: (0, 0)),          # b3 padded (f32)
    ]
    out_specs = pl.BlockSpec((block_b, act_pad), lambda i: (i, 0))

    itemsize = jnp.dtype(mxu_dtype).itemsize
    weight_bytes = (obs_size * h1 + h1 * h2 + h2 * act_pad) * itemsize \
        + (h1 + h2 + act_pad) * 4
    cost = pl.CostEstimate(
        flops=2 * B_pad * (obs_size * h1 + h1 * h2 + h2 * act_pad),
        transcendentals=B_pad * act_pad,
        bytes_accessed=B_pad * obs_size * 4 + B_pad * act_pad * 4 + weight_bytes,
    )

    out_pad = pl.pallas_call(
        actor_kernel,
        out_shape=jax.ShapeDtypeStruct((B_pad, act_pad), jnp.float32),
        grid_spec=pl.GridSpec(
            grid=grid,
            in_specs=in_specs,
            out_specs=out_specs,
        ),
        compiler_params=pltpu.CompilerParams(
            dimension_semantics=("parallel",),
        ),
        cost_estimate=cost,
    )(obs, w1c, b1, w2c, b2, w3c, b3p)

    return out_pad[:B, :act]


def actor_forward(obs, params, block_b=None, mxu_dtype=jnp.bfloat16):
    """obs: [B, obs_size] f32. params: dict of w1,b1,w2,b2,w3,b3 (f32, [in,out])."""
    if block_b is None:
        block_b = _choose_block_b(obs.shape[0])
    else:
        block_b = _round_up(block_b, SUBLANE)
    return _actor_forward_impl(
        obs, params["w1"], params["b1"], params["w2"], params["b2"],
        params["w3"], params["b3"], block_b, mxu_dtype)


def init_actor_params(key, obs_size, action_size, fc_units=(128, 128)):
    """Deterministic init mirroring Actor.reset_parameters().

    hidden_init uses layer.weight.size()[0] == out_features as "fan_in" (that is
    what the reference PyTorch code does), reproduced exactly. Biases keep
    PyTorch's default Linear init: U(-1/sqrt(in_features), +).
    """
    k = jax.random.split(key, 6)
    h1, h2 = fc_units

    lim1 = 1.0 / jnp.sqrt(jnp.float32(h1))          # fan_in = weight.size(0) = out
    lim2 = 1.0 / jnp.sqrt(jnp.float32(h2))
    lim3 = 3e-3

    blim1 = 1.0 / jnp.sqrt(jnp.float32(obs_size))   # default bias init uses in_features
    blim2 = 1.0 / jnp.sqrt(jnp.float32(h1))
    blim3 = 1.0 / jnp.sqrt(jnp.float32(h2))

    # Weights stored [in, out] (transposed vs PyTorch) for x @ W.
    return {
        "w1": jax.random.uniform(k[0], (obs_size, h1), jnp.float32, -lim1, lim1),
        "b1": jax.random.uniform(k[1], (1, h1), jnp.float32, -blim1, blim1),
        "w2": jax.random.uniform(k[2], (h1, h2), jnp.float32, -lim2, lim2),
        "b2": jax.random.uniform(k[3], (1, h2), jnp.float32, -blim2, blim2),
        "w3": jax.random.uniform(k[4], (h2, action_size), jnp.float32, -lim3, lim3),
        "b3": jax.random.uniform(k[5], (1, action_size), jnp.float32, -blim3, blim3),
    }


def actor_reference(obs, params, mxu_dtype=jnp.float32):
    """Pure-JAX reference. With mxu_dtype=bf16 it mirrors the kernel's casts."""
    w1 = params["w1"].astype(mxu_dtype)
    w2 = params["w2"].astype(mxu_dtype)
    w3 = params["w3"].astype(mxu_dtype)
    x = obs.astype(mxu_dtype)
    h1 = jnp.maximum(
        jnp.dot(x, w1, preferred_element_type=jnp.float32) + params["b1"], 0.0)
    h2 = jnp.maximum(
        jnp.dot(h1.astype(mxu_dtype), w2, preferred_element_type=jnp.float32)
        + params["b2"], 0.0)
    y = jnp.dot(h2.astype(mxu_dtype), w3, preferred_element_type=jnp.float32) \
        + params["b3"]
    return jnp.tanh(y)


if __name__ == "__main__":
    key = jax.random.PRNGKey(0)
    kp, kx1, kx2 = jax.random.split(key, 3)

    obs_size, action_size = 32, 8
    fc_units = (128, 128)
    params = init_actor_params(kp, obs_size, action_size, fc_units)

    # Case 1: tiny batch (single grid step).
    B1 = 8
    obs1 = jax.random.normal(kx1, (B1, obs_size), jnp.float32)
    out1 = jax.block_until_ready(actor_forward(obs1, params))
    ref1_bf16 = actor_reference(obs1, params, jnp.bfloat16)
    ref1_f32 = actor_reference(obs1, params, jnp.float32)
    assert out1.shape == (B1, action_size)
    assert jnp.allclose(out1, ref1_bf16, atol=3e-3, rtol=3e-3)
    assert jnp.allclose(out1, ref1_f32, atol=3e-2, rtol=3e-2)

    # Case 2: ragged batch (exercises zero-padding + multi-step parallel grid).
    B2 = 300
    obs2 = jax.random.normal(kx2, (B2, obs_size), jnp.float32)
    out2 = jax.block_until_ready(actor_forward(obs2, params))
    ref2_bf16 = actor_reference(obs2, params, jnp.bfloat16)
    ref2_f32 = actor_reference(obs2, params, jnp.float32)
    assert out2.shape == (B2, action_size)
    assert jnp.allclose(out2, ref2_bf16, atol=3e-3, rtol=3e-3)
    assert jnp.allclose(out2, ref2_f32, atol=3e-2, rtol=3e-2)

    print("KERNEL_OK")
</pallas_src>

<mosaic_0001>
module attributes {stable_mosaic.version = 11 : i64} {
  func.func @actor_kernel(%arg0: i32, %arg1: memref<8x32xf32, #tpu.memory_space<vmem>>, %arg2: memref<32x128xbf16, #tpu.memory_space<vmem>>, %arg3: memref<1x128xf32, #tpu.memory_space<vmem>>, %arg4: memref<128x128xbf16, #tpu.memory_space<vmem>>, %arg5: memref<1x128xf32, #tpu.memory_space<vmem>>, %arg6: memref<128x128xbf16, #tpu.memory_space<vmem>>, %arg7: memref<1x128xf32, #tpu.memory_space<vmem>>, %arg8: memref<8x128xf32, #tpu.memory_space<vmem>>) attributes {dimension_semantics = [#tpu.dimension_semantics<parallel>], iteration_bounds = array<i64: 1>, scalar_prefetch = 0 : i64, scratch_operands = 0 : i64, tpu.core_type = #tpu.core_type<tc>, window_params = [{transform_indices = @transform_0, window_bounds = array<i64: 8, 32>}, {pipeline_mode = #tpu.pipeline_mode<synchronous>, transform_indices = @transform_1, window_bounds = array<i64: 32, 128>}, {pipeline_mode = #tpu.pipeline_mode<synchronous>, transform_indices = @transform_2, window_bounds = array<i64: 1, 128>}, {pipeline_mode = #tpu.pipeline_mode<synchronous>, transform_indices = @transform_3, window_bounds = array<i64: 128, 128>}, {pipeline_mode = #tpu.pipeline_mode<synchronous>, transform_indices = @transform_4, window_bounds = array<i64: 1, 128>}, {pipeline_mode = #tpu.pipeline_mode<synchronous>, transform_indices = @transform_5, window_bounds = array<i64: 128, 128>}, {pipeline_mode = #tpu.pipeline_mode<synchronous>, transform_indices = @transform_6, window_bounds = array<i64: 1, 128>}, {transform_indices = @transform_7, window_bounds = array<i64: 8, 128>}]} {
    %c0 = arith.constant 0 : index
    %c0_0 = arith.constant 0 : index
    %0 = vector.load %arg1[%c0, %c0_0] : memref<8x32xf32, #tpu.memory_space<vmem>>, vector<8x32xf32>
    %1 = arith.truncf %0 : vector<8x32xf32> to vector<8x32xbf16>
    %c0_1 = arith.constant 0 : index
    %c0_2 = arith.constant 0 : index
    %2 = vector.load %arg2[%c0_1, %c0_2] : memref<32x128xbf16, #tpu.memory_space<vmem>>, vector<32x128xbf16>
    %cst = arith.constant dense<0.000000e+00> : vector<8x128xf32>
    %3 = tpu.matmul %1, %2, %cst {dimension_numbers = #tpu.dot_dimension_numbers<[1], [0], [0], [1], [0, 0, 1, 1], [], []>} : vector<8x32xbf16>, vector<32x128xbf16>, vector<8x128xf32> -> vector<8x128xf32>
    %c0_3 = arith.constant 0 : index
    %c0_4 = arith.constant 0 : index
    %4 = vector.load %arg3[%c0_3, %c0_4] : memref<1x128xf32, #tpu.memory_space<vmem>>, vector<1x128xf32>
    %5 = vector.broadcast %4 : vector<1x128xf32> to vector<8x128xf32>
    %6 = arith.addf %3, %5 : vector<8x128xf32>
    %cst_5 = arith.constant 0.000000e+00 : f32
    %7 = vector.broadcast %cst_5 : f32 to vector<8x128xf32>
    %8 = arith.maximumf %6, %7 : vector<8x128xf32>
    %9 = arith.truncf %8 : vector<8x128xf32> to vector<8x128xbf16>
    %c0_6 = arith.constant 0 : index
    %c0_7 = arith.constant 0 : index
    %10 = vector.load %arg4[%c0_6, %c0_7] : memref<128x128xbf16, #tpu.memory_space<vmem>>, vector<128x128xbf16>
    %cst_8 = arith.constant dense<0.000000e+00> : vector<8x128xf32>
    %11 = tpu.matmul %9, %10, %cst_8 {dimension_numbers = #tpu.dot_dimension_numbers<[1], [0], [0], [1], [0, 0, 1, 1], [], []>} : vector<8x128xbf16>, vector<128x128xbf16>, vector<8x128xf32> -> vector<8x128xf32>
    %c0_9 = arith.constant 0 : index
    %c0_10 = arith.constant 0 : index
    %12 = vector.load %arg5[%c0_9, %c0_10] : memref<1x128xf32, #tpu.memory_space<vmem>>, vector<1x128xf32>
    %13 = vector.broadcast %12 : vector<1x128xf32> to vector<8x128xf32>
    %14 = arith.addf %11, %13 : vector<8x128xf32>
    %cst_11 = arith.constant 0.000000e+00 : f32
    %15 = vector.broadcast %cst_11 : f32 to vector<8x128xf32>
    %16 = arith.maximumf %14, %15 : vector<8x128xf32>
    %17 = arith.truncf %16 : vector<8x128xf32> to vector<8x128xbf16>
    %c0_12 = arith.constant 0 : index
    %c0_13 = arith.constant 0 : index
    %18 = vector.load %arg6[%c0_12, %c0_13] : memref<128x128xbf16, #tpu.memory_space<vmem>>, vector<128x128xbf16>
    %cst_14 = arith.constant dense<0.000000e+00> : vector<8x128xf32>
    %19 = tpu.matmul %17, %18, %cst_14 {dimension_numbers = #tpu.dot_dimension_numbers<[1], [0], [0], [1], [0, 0, 1, 1], [], []>} : vector<8x128xbf16>, vector<128x128xbf16>, vector<8x128xf32> -> vector<8x128xf32>
    %c0_15 = arith.constant 0 : index
    %c0_16 = arith.constant 0 : index
    %20 = vector.load %arg7[%c0_15, %c0_16] : memref<1x128xf32, #tpu.memory_space<vmem>>, vector<1x128xf32>
    %21 = vector.broadcast %20 : vector<1x128xf32> to vector<8x128xf32>
    %22 = arith.addf %19, %21 : vector<8x128xf32>
    %23 = math.tanh %22 : vector<8x128xf32>
    %c0_17 = arith.constant 0 : index
    %c0_18 = arith.constant 0 : index
    %24 = vector.load %arg8[%c0_17, %c0_18] : memref<8x128xf32, #tpu.memory_space<vmem>>, vector<8x128xf32>
    tpu.vector_store %arg8[%c0_17, %c0_18], %23 {strides = array<i32>} : memref<8x128xf32, #tpu.memory_space<vmem>>, vector<8x128xf32>,
    return
  }
  func.func @transform_0(%arg0: i32) -> (i32, i32) {
    %c0_i32 = arith.constant 0 : i32
    %c0_i32_0 = arith.constant 0 : i32
    return %arg0, %c0_i32 : i32, i32
  }
  func.func @transform_1(%arg0: i32) -> (i32, i32) {
    %c0_i32 = arith.constant 0 : i32
    %c0_i32_0 = arith.constant 0 : i32
    %c0_i32_1 = arith.constant 0 : i32
    return %c0_i32, %c0_i32_0 : i32, i32
  }
  func.func @transform_2(%arg0: i32) -> (i32, i32) {
    %c0_i32 = arith.constant 0 : i32
    %c0_i32_0 = arith.constant 0 : i32
    %c0_i32_1 = arith.constant 0 : i32
    return %c0_i32, %c0_i32_0 : i32, i32
  }
  func.func @transform_3(%arg0: i32) -> (i32, i32) {
    %c0_i32 = arith.constant 0 : i32
    %c0_i32_0 = arith.constant 0 : i32
    %c0_i32_1 = arith.constant 0 : i32
    return %c0_i32, %c0_i32_0 : i32, i32
  }
  func.func @transform_4(%arg0: i32) -> (i32, i32) {
    %c0_i32 = arith.constant 0 : i32
    %c0_i32_0 = arith.constant 0 : i32
    %c0_i32_1 = arith.constant 0 : i32
    return %c0_i32, %c0_i32_0 : i32, i32
  }
  func.func @transform_5(%arg0: i32) -> (i32, i32) {
    %c0_i32 = arith.constant 0 : i32
    %c0_i32_0 = arith.constant 0 : i32
    %c0_i32_1 = arith.constant 0 : i32
    return %c0_i32, %c0_i32_0 : i32, i32
  }
  func.func @transform_6(%arg0: i32) -> (i32, i32) {
    %c0_i32 = arith.constant 0 : i32
    %c0_i32_0 = arith.constant 0 : i32
    %c0_i32_1 = arith.constant 0 : i32
    return %c0_i32, %c0_i32_0 : i32, i32
  }
  func.func @transform_7(%arg0: i32) -> (i32, i32) {
    %c0_i32 = arith.constant 0 : i32
    %c0_i32_0 = arith.constant 0 : i32
    return %arg0, %c0_i32 : i32, i32
  }
}

</mosaic_0001>

<bundles_post_ra>
// kernel: _actor_forward_impl.1
= control target key start
LH: loop header
LB: loop body
LE: loop exit
PB: predicated region body
PF: predicated region fallthrough
CT: control target
= control target key end

     0   :  { %v475_v1 = vmov 0.0   ;;  %vm476_vm0 = vmmov 0   ;;  %vm53_vm1 = vcmask 261120   ;;  %s611_s0 = inlined_call_operand.vmem [shape: f32[8,32], index: 0, kind: input, shape index: {}]   ;;  %s612_s1 = inlined_call_operand.vmem [shape: bf16[32,128], index: 1, kind: input, shape index: {}]   ;;  %s613_s2 = inlined_call_operand.vmem [shape: f32[1,128], index: 2, kind: input, shape index: {}]   ;;  %s614_s3 = inlined_call_operand.vmem [shape: bf16[128,128], index: 3, kind: input, shape index: {}]   ;;  %s615_s4 = inlined_call_operand.vmem [shape: f32[1,128], index: 4, kind: input, shape index: {}]   ;;  %s616_s5 = inlined_call_operand.vmem [shape: bf16[128,128], index: 5, kind: input, shape index: {}]   ;;  %s617_s6 = inlined_call_operand.vmem [shape: f32[1,128], index: 6, kind: input, shape index: {}]   ;;  %s618_s7 = inlined_call_operand.hbm [shape: f32[8,128], index: 7, kind: output, shape index: {}]  }
   0x1   :  { %v433_v0 = vld [vmem:[%s612_s1 + $0x8] sm:$0xff]   ;;  %382 = vmatprep.subr.bf16.mxu0 %v475_v1  ;;  %v434_v2 = vld [vmem:[%s612_s1] sm:$0xff]   ;;  %390 = vmatprep.subr.bf16.mxu1 %v475_v1  ;;  %v435_v4 = vld [vmem:[%s614_s3 + $0x38] sm:$0xff]  }
   0x2   :  { %383 = vmatpush3.bf16.msra.mxu0 %v433_v0  ;;  %386 = vmatprep.mubr.msk.bf16.mxu0 %vm476_vm0, %v475_v1  ;;  %v28_v3 = vld [vmem:[%s611_s0] sm:$0xff]  ;;  %v436_v6 = vld [vmem:[%s614_s3 + $0x30] sm:$0xff]   ;;  %v437_v7 = vld [vmem:[%s614_s3 + $0x28] sm:$0xff]  }
   0x3   :  { %384 = vmatprep.subr.bf16.mxu0 %v475_v1  ;;  %406 = vmatprep.mubr.msk.bf16.mxu1 %vm476_vm0, %v475_v1  ;;  %v29_v5 = vpack.c.bf16 %v28_v3, %v28_v3  ;;  %v438_v8 = vld [vmem:[%s614_s3 + $0x20] sm:$0xff]  }
   0x4   :  { %391 = vmatpush3.bf16.msra.mxu1 %v435_v4 }
   0x5   :  { %392 = vmatprep.subr.bf16.mxu1 %v475_v1 }
   0x6   :  { %385 = vmatpush3.bf16.msra.mxu0 %v434_v2 }
   0x7   :  { %410 = vmatprep.subr.bf16.mxu0 %v475_v1 }
   0x8   :  { %393 = vmatpush3.bf16.msra.mxu1 %v436_v6 }
   0x9   :  { %387 = vmatmul.mubr.msk.bf16.vlgmr.msra.gmra.mxu0 %vm53_vm1, %v29_v5  ;;  %394 = vmatprep.subr.bf16.mxu1 %v475_v1 }
   0xa   :  { %426 = vmatprep.mubr.msk.bf16.mxu0 %vm476_vm0, %v475_v1 }
   0xc   :  { %395 = vmatpush3.bf16.msra.mxu1 %v437_v7 }
   0xd   :  { %396 = vmatprep.subr.bf16.mxu1 %v475_v1 }
   0xe   :  { %12 = vsyncpa [#allocation3], 0  ;;  %v439_v9 = vld [vmem:[%s614_s3 + $0x18] sm:$0xff]   ;;  %v440_v10 = vld [vmem:[%s614_s3 + $0x10] sm:$0xff]  }
   0xf   :  { %v441_v11 = vld [vmem:[%s614_s3 + $0x8] sm:$0xff]   ;;  %v442_v12 = vld [vmem:[%s614_s3] sm:$0xff]   ;;  %v443_v13 = vld [vmem:[%s616_s5 + $0x38] sm:$0xff]  }
  0x10   :  { %397 = vmatpush3.bf16.msra.mxu1 %v438_v8  ;;  %411 = vmatpush3.bf16.msra.mxu0 %v443_v13  ;;  %v444_v14 = vld [vmem:[%s616_s5 + $0x30] sm:$0xff]   ;;  %v445_v15 = vld [vmem:[%s616_s5 + $0x28] sm:$0xff]   ;;  %v446_v16 = vld [vmem:[%s616_s5 + $0x20] sm:$0xff]  }
  0x11   :  { %398 = vmatprep.subr.bf16.mxu1 %v475_v1  ;;  %412 = vmatprep.subr.bf16.mxu0 %v475_v1  ;;  %v447_v17 = vld [vmem:[%s616_s5 + $0x18] sm:$0xff]   ;;  %v448_v18 = vld [vmem:[%s616_s5 + $0x10] sm:$0xff]   ;;  %v339_v19 = vld [vmem:[%s613_s2] ss:$0 sm:$0xff] }
  0x12   :  { %v449_v27 = vld [vmem:[%s616_s5 + $0x8] sm:$0xff]   ;;  %v450_v28 = vld [vmem:[%s616_s5] sm:$0xff]   ;;  %s477_s5 = smov [#allocation2]  }
  0x13   :  { %v343_v29 = vld [vmem:[%s615_s4] ss:$0 sm:$0xff]  ;;  %s331_s4 = sshll.u32 %s477_s5, 4  ;;  %s332_s4 = int_to_ptr.vmem [resolvable:$true] %s331_s4 }
  0x14   :  { %399 = vmatpush3.bf16.msra.mxu1 %v439_v9  ;;  %413 = vmatpush3.bf16.msra.mxu0 %v444_v14  ;;  %v352_v37 = vld [vmem:[%s617_s6] ss:$0 sm:$0xff]  ;;  %s453_s16 = scalar_lea.vmem %s332_s4, 128  ;;  %p458_p1 = scmp.lt.s32.totalorder %s332_s4, %s332_s4 }
  0x15   :  { %400 = vmatprep.subr.bf16.mxu1 %v475_v1  ;;  %414 = vmatprep.subr.bf16.mxu0 %v475_v1  ;;  %p454_p0 = scmp.ne.s32.totalorder %s332_s4, %s453_s16  ;;  %p459_p2 = scmp.lt.s32.totalorder %s453_s16, %s453_s16 }
  0x17   :  { %p460_p3 = por %p459_p2, %p458_p1 }
  0x18   :  { %401 = vmatpush3.bf16.msra.mxu1 %v440_v10  ;;  %415 = vmatpush3.bf16.msra.mxu0 %v445_v15 }
  0x19   :  { %402 = vmatprep.subr.bf16.mxu1 %v475_v1  ;;  %416 = vmatprep.subr.bf16.mxu0 %v475_v1  ;;  %p461_p4 = pnand %p460_p3, %p454_p0 }
  0x1c   :  { %403 = vmatpush3.bf16.msra.mxu1 %v441_v11  ;;  %417 = vmatpush3.bf16.msra.mxu0 %v446_v16 }
  0x1d   :  { %404 = vmatprep.subr.bf16.mxu1 %v475_v1  ;;  %418 = vmatprep.subr.bf16.mxu0 %v475_v1 }
  0x20   :  { %405 = vmatpush3.bf16.msra.mxu1 %v442_v12  ;;  %419 = vmatpush3.bf16.msra.mxu0 %v447_v17 }
  0x21   :  { %420 = vmatprep.subr.bf16.mxu0 %v475_v1 }
  0x24   :  { %421 = vmatpush3.bf16.msra.mxu0 %v448_v18 }
  0x25   :  { %422 = vmatprep.subr.bf16.mxu0 %v475_v1 }
  0x28   :  { %423 = vmatpush3.bf16.msra.mxu0 %v449_v27 }
  0x29   :  { %424 = vmatprep.subr.bf16.mxu0 %v475_v1 }
  0x2c   :  { %425 = vmatpush3.bf16.msra.mxu0 %v450_v28 }
  0xc9   :  { %v91_v20 = vpop.f32.mrf.mxu0 }
  0xca   :  { %v92_v21 = vadd.f32 %v339_v19, %v91_v20 }
  0xcb   :  { %v388_v22 = vpop.f32.mrf.mxu0 }
  0xcc   :  { %v97_v23 = vmax.f32 %v92_v21, 0.0 }
  0xcd   :  { %v94_v24 = vpop.f32.mrf.mxu0 }
  0xce   :  { %v98_v25 = vpack.c.bf16 %v97_v23, %v97_v23 }
  0xcf   :  { %v389_v26 = vpop.f32.mrf.mxu0 }
  0xd0   :  { %407 = vmatmul.mubr.bf16.vlgmr.msra.gmra.mxu1 %v98_v25 }
 0x190   :  { %v204_v30 = vpop.f32.mrf.mxu1 }
 0x191   :  { %v205_v31 = vadd.f32 %v343_v29, %v204_v30 }
 0x192   :  { %v408_v32 = vpop.f32.mrf.mxu1 }
 0x193   :  { %v210_v33 = vmax.f32 %v205_v31, 0.0 }
 0x194   :  { %v207_v34 = vpop.f32.mrf.mxu1 }
 0x195   :  { %v211_v35 = vpack.c.bf16 %v210_v33, %v210_v33 }
 0x196   :  { %v409_v36 = vpop.f32.mrf.mxu1 }
 0x197   :  { %427 = vmatmul.mubr.bf16.vlgmr.msra.gmra.mxu0 %v211_v35 }
 0x257   :  { %v317_v38 = vpop.f32.mrf.mxu0 }
 0x258   :  { %v318_v39 = vadd.f32 %v352_v37, %v317_v38 }
 0x259   :  { %v428_v40 = vpop.f32.mrf.mxu0 }
 0x25a   :  { %451 = vtanh.f32 %v318_v39 }
 0x25b   :  { %v320_v41 = vpop.f32.mrf.mxu0 }
 0x25d   :  { %v429_v42 = vpop.f32.mrf.mxu0 }
 0x267   :  { %v452_v43 = vpop.eup %451 }
 0x268   :  { %324 = vst [vmem:[#allocation2] sm:$0xff] %v452_v43 }
 0x269   :  { %464 = shalt.err (!%p461_p4)
}
 0x26a   :  { %334 = dma.vmem_to_hbm [thread:$0]  %s332_s4, 128, %s618_s7, [#allocation3]  }
 0x26b   :  { %473 = dma.done.wait [#allocation3], 128  }
 0x26c   :  { %474 = vsyncadd [#allocation3], 4294967168 }
 0x26d   :  { %338 = vsyncpa [#allocation3], 1 }

</bundles_post_ra>
